<compile_context>
chip_gen: v5e
topology: v5e:2x2
jax: 0.10.0
libtpu: 0.0.40
codegen_flags: <defaults>
</compile_context>

<pallas_src>
import functools
import math

import jax
import jax.numpy as jnp
from jax.experimental import pallas as pl
from jax.experimental.pallas import tpu as pltpu


_SUBLANE_F32 = 8
_SUBLANE_16BIT = 16


def _round_up(x, m):
    return ((x + m - 1) // m) * m


def _cdiv(a, b):
    return -(-a // b)


def _vmem_capacity_bytes():
    """Generation-aware VMEM capacity (128 MiB on v5e/v6e, 64 MiB on v7x)."""
    try:
        return int(pltpu.get_tpu_info().vmem_capacity_bytes)
    except Exception:
        # Conservative (v7x-sized) fallback if the query is unavailable.
        return 64 * 1024 * 1024


def _detect_buffered_support():
    """One-time capability check for pipeline_mode=pl.Buffered(1) on BlockSpec."""
    try:
        pl.BlockSpec((8, 128), lambda i: (0, 0), pipeline_mode=pl.Buffered(1))
        return True
    except Exception:
        return False


_BUFFERED_OK = _detect_buffered_support()


def _mlp_kernel(x_ref, *refs):
    """Fused MLP: Linear -> ReLU -> ... -> Linear (no activation after last layer),
    matching NNBlock.forward.  refs = (w0, b0, ..., w_{L-1}, b_{L-1}, out_ref)."""
    out_ref = refs[-1]
    params = refs[:-1]
    n_layers = len(params) // 2

    h = x_ref[...]
    for i in range(n_layers):
        w = params[2 * i][...]          # (in_f, out_f), compute dtype (f32 or bf16)
        b = params[2 * i + 1][...]      # (1, out_f), f32
        # MXU matmul in the weight dtype, accumulate in f32; bias add in f32 (VPU).
        h = jnp.dot(h.astype(w.dtype), w, preferred_element_type=jnp.float32) + b
        if i < n_layers - 1:
            h = jnp.maximum(h, 0.0)     # ReLU in f32 (v5e-safe VPU path)
    out_ref[...] = h.astype(out_ref.dtype)


@functools.partial(jax.jit,
                   static_argnames=("batch_tile", "single_buffer",
                                    "vmem_limit_bytes"))
def _mlp_forward(x, params, *, batch_tile, single_buffer, vmem_limit_bytes):
    """Jitted forward: row-pad x to a multiple of batch_tile, run the fused
    Pallas kernel over a 1-D parallel batch grid, slice the valid rows back."""
    n_layers = len(params) // 2
    B, in_dim = x.shape
    out_dim = params[-1].shape[-1]

    B_total = _round_up(B, batch_tile)
    x_pad = x if B_total == B else jnp.pad(x, ((0, B_total - B), (0, 0)))

    def const_map(i):                   # weights/biases are grid-invariant
        return (0, 0)

    # Grid-invariant params don't need double-buffering; request a single buffer
    # only when that materially reduces resident VMEM (feature-detected above).
    w_kw = {"pipeline_mode": pl.Buffered(1)} if single_buffer else {}

    in_specs = [pl.BlockSpec((batch_tile, in_dim), lambda i: (i, 0))]
    for li in range(n_layers):
        in_specs.append(pl.BlockSpec(params[2 * li].shape, const_map, **w_kw))
        in_specs.append(pl.BlockSpec(params[2 * li + 1].shape, const_map, **w_kw))

    out_specs = pl.BlockSpec((batch_tile, out_dim), lambda i: (i, 0))

    out_full = pl.pallas_call(
        _mlp_kernel,
        out_shape=jax.ShapeDtypeStruct((B_total, out_dim), x.dtype),
        grid_spec=pltpu.PrefetchScalarGridSpec(
            num_scalar_prefetch=0,
            grid=(B_total // batch_tile,),
            in_specs=in_specs,
            out_specs=out_specs,
        ),
        compiler_params=pltpu.CompilerParams(
            dimension_semantics=("parallel",),   # batch axis: megacore-shardable
            vmem_limit_bytes=vmem_limit_bytes,
        ),
    )(x_pad, *params)

    return out_full if B_total == B else out_full[:B]


def prepare_nn_block_params(weights, biases, compute_dtype=jnp.float32):
    """One-time weight prep: PyTorch (out_f, in_f) -> (in_f, out_f), cast weights
    to the MXU compute dtype, keep biases in f32 (row-shaped for broadcasting)."""
    params = []
    for w, b in zip(weights, biases):
        w_t = jnp.asarray(w, jnp.float32).T.astype(compute_dtype)   # (in_f, out_f)
        b_r = jnp.asarray(b, jnp.float32).reshape(1, -1)            # (1, out_f)
        params.extend([w_t, b_r])
    return tuple(params)


def nn_block_forward(x, weights, biases, *, batch_tile=None,
                     compute_dtype=jnp.float32, prepared=None):
    """NNBlock forward pass with one fused Pallas kernel.

    x:             (B, arch[0])
    weights:       list of (arch[i+1], arch[i]) arrays (PyTorch Linear convention)
    biases:        list of (arch[i+1],) arrays
    compute_dtype: dtype fed to the MXU (jnp.float32 or jnp.bfloat16); accumulation,
                   bias add and ReLU are always f32.  bf16 is recommended on v5e.
    prepared:      optional output of prepare_nn_block_params (skips per-call prep).
    """
    x = jnp.asarray(x)
    if prepared is None:
        prepared = prepare_nn_block_params(weights, biases, compute_dtype)
    params = prepared

    n_layers = len(params) // 2
    B, in_dim = x.shape
    out_dim = int(params[-1].shape[-1])

    # bf16 packs 2 rows per sublane -> align batch tiles to 16 in that case.
    sub = (_SUBLANE_16BIT
           if (jnp.dtype(compute_dtype).itemsize == 2 or x.dtype.itemsize == 2)
           else _SUBLANE_F32)

    w_bytes = sum(int(params[2 * i].size) * params[2 * i].dtype.itemsize
                  for i in range(n_layers))
    b_bytes = sum(int(params[2 * i + 1].size) * params[2 * i + 1].dtype.itemsize
                  for i in range(n_layers))
    max_dim = max([in_dim] + [int(params[2 * i].shape[1]) for i in range(n_layers)])

    vmem_cap = _vmem_capacity_bytes()
    budget = int(0.70 * vmem_cap)            # tile-sizing budget
    vmem_limit = int(0.80 * vmem_cap)        # requested scoped-VMEM limit

    # Single-buffer the resident weight stack only when double-buffering it would
    # eat a meaningful slice of VMEM (keeps the tiny-model path on default specs).
    single_buffer = _BUFFERED_OK and (2 * (w_bytes + b_bytes) > budget // 4)
    param_bufs = 1 if single_buffer else 2
    # TODO(synk): for hidden widths whose weights alone exceed the VMEM budget,
    # K/N-tile the matmuls from HBM via pltpu.emit_pipeline instead of holding
    # the full weight stack resident.

    x_itemsize = x.dtype.itemsize

    def est(bt):
        return (param_bufs * (w_bytes + b_bytes)      # resident weights/biases
                + 2 * bt * in_dim * x_itemsize        # double-buffered x tile
                + 2 * bt * out_dim * x_itemsize       # double-buffered out tile
                + 3 * bt * max_dim * 4)               # live f32 intermediates

    Bp = _round_up(B, sub)
    if batch_tile is None:
        bt = _round_up(min(1024, Bp), sub)            # big tiles: ~85%+ of HBM roofline
        while bt > sub and est(bt) > budget:
            bt = max(sub, _round_up(bt // 2, sub))
        n_steps = _cdiv(Bp, bt)
        if Bp >= 2 * sub:
            n_steps = max(n_steps, 2)                 # >=2 parallel steps for v7x's 2 TCs
        bt = _round_up(_cdiv(Bp, n_steps), sub)       # balanced: avoid a mostly-padding tail
    else:
        bt = max(sub, _round_up(min(int(batch_tile), Bp), sub))
        while bt > sub and est(bt) > budget:
            bt = max(sub, _round_up(bt // 2, sub))

    return _mlp_forward(x, params, batch_tile=bt, single_buffer=single_buffer,
                        vmem_limit_bytes=vmem_limit)


def make_nn_block_forward(weights, biases, *, batch_tile=None,
                          compute_dtype=jnp.float32):
    """Factory that hoists weight prep out of the per-call path (done once)."""
    prepared = prepare_nn_block_params(weights, biases, compute_dtype)

    def forward(x):
        return nn_block_forward(x, weights, biases, batch_tile=batch_tile,
                                compute_dtype=compute_dtype, prepared=prepared)

    return forward


def init_nn_block_params(arch, key):
    """Deterministic init mimicking torch.nn.Linear's default
    U(-1/sqrt(fan_in), 1/sqrt(fan_in)) for both weight and bias."""
    weights, biases = [], []
    for i in range(len(arch) - 1):
        in_f, out_f = arch[i], arch[i + 1]
        key, kw, kb = jax.random.split(key, 3)
        bound = 1.0 / math.sqrt(in_f)
        weights.append(jax.random.uniform(kw, (out_f, in_f), jnp.float32,
                                          -bound, bound))
        biases.append(jax.random.uniform(kb, (out_f,), jnp.float32,
                                         -bound, bound))
    return weights, biases


def reference_forward(x, weights, biases):
    """Pure-JAX reference matching NNBlock.forward semantics."""
    h = x
    for i in range(len(weights)):
        h = h @ weights[i].T + biases[i]
        if i < len(weights) - 1:
            h = jnp.maximum(h, 0.0)
    return h


if __name__ == "__main__":
    # Architecture consistent with NNBlock(arch): 3 Linear layers.
    arch = [32, 64, 64, 16]

    key = jax.random.PRNGKey(0)
    weights, biases = init_nn_block_params(arch, key)

    # Case 1: tiny batch, f32 end-to-end (tight tolerance), single grid step.
    key, kx = jax.random.split(key)
    x1 = jax.random.normal(kx, (8, arch[0]), jnp.float32)
    out1 = jax.block_until_ready(nn_block_forward(x1, weights, biases))
    ref1 = reference_forward(x1, weights, biases)
    assert out1.shape == ref1.shape
    assert jnp.allclose(out1, ref1, atol=1e-4, rtol=1e-4), "f32 mismatch (case 1)"

    # Case 2: ragged batch + explicit small batch tile -> multi-step parallel grid.
    key, kx = jax.random.split(key)
    x2 = jax.random.normal(kx, (40, arch[0]), jnp.float32)
    out2 = jax.block_until_ready(
        nn_block_forward(x2, weights, biases, batch_tile=16))
    ref2 = reference_forward(x2, weights, biases)
    assert out2.shape == ref2.shape
    assert jnp.allclose(out2, ref2, atol=1e-4, rtol=1e-4), "f32 mismatch (case 2)"

    # Case 3: cached weight prep (factory) + bf16 MXU operands with f32
    # accumulation + automatic balanced tiling (loose tolerance).
    fwd_bf16 = make_nn_block_forward(weights, biases, compute_dtype=jnp.bfloat16)
    out3 = jax.block_until_ready(fwd_bf16(x2))
    assert jnp.allclose(out3, ref2, atol=5e-2, rtol=5e-2), "bf16 mismatch (case 3)"

    # Case 4: larger batch exercising the default balanced-tile / >=2-step path.
    key, kx = jax.random.split(key)
    x4 = jax.random.normal(kx, (300, arch[0]), jnp.float32)
    out4 = jax.block_until_ready(nn_block_forward(x4, weights, biases))
    ref4 = reference_forward(x4, weights, biases)
    assert jnp.allclose(out4, ref4, atol=1e-4, rtol=1e-4), "f32 mismatch (case 4)"

    print("KERNEL_OK")
</pallas_src>

<mosaic_0001>
module attributes {stable_mosaic.version = 11 : i64} {
  func.func @_mlp_kernel(%arg0: i32, %arg1: memref<8x32xf32, #tpu.memory_space<vmem>>, %arg2: memref<32x64xf32, #tpu.memory_space<vmem>>, %arg3: memref<1x64xf32, #tpu.memory_space<vmem>>, %arg4: memref<64x64xf32, #tpu.memory_space<vmem>>, %arg5: memref<1x64xf32, #tpu.memory_space<vmem>>, %arg6: memref<64x16xf32, #tpu.memory_space<vmem>>, %arg7: memref<1x16xf32, #tpu.memory_space<vmem>>, %arg8: memref<8x16xf32, #tpu.memory_space<vmem>>) attributes {dimension_semantics = [#tpu.dimension_semantics<parallel>], iteration_bounds = array<i64: 1>, scalar_prefetch = 0 : i64, scratch_operands = 0 : i64, tpu.core_type = #tpu.core_type<tc>, window_params = [{transform_indices = @transform_0, window_bounds = array<i64: 8, 32>}, {pipeline_mode = #tpu.pipeline_mode<synchronous>, transform_indices = @transform_1, window_bounds = array<i64: 32, 64>}, {pipeline_mode = #tpu.pipeline_mode<synchronous>, transform_indices = @transform_2, window_bounds = array<i64: 1, 64>}, {pipeline_mode = #tpu.pipeline_mode<synchronous>, transform_indices = @transform_3, window_bounds = array<i64: 64, 64>}, {pipeline_mode = #tpu.pipeline_mode<synchronous>, transform_indices = @transform_4, window_bounds = array<i64: 1, 64>}, {pipeline_mode = #tpu.pipeline_mode<synchronous>, transform_indices = @transform_5, window_bounds = array<i64: 64, 16>}, {pipeline_mode = #tpu.pipeline_mode<synchronous>, transform_indices = @transform_6, window_bounds = array<i64: 1, 16>}, {transform_indices = @transform_7, window_bounds = array<i64: 8, 16>}]} {
    %c0 = arith.constant 0 : index
    %c0_0 = arith.constant 0 : index
    %0 = vector.load %arg1[%c0, %c0_0] : memref<8x32xf32, #tpu.memory_space<vmem>>, vector<8x32xf32>
    %c0_1 = arith.constant 0 : index
    %c0_2 = arith.constant 0 : index
    %1 = vector.load %arg2[%c0_1, %c0_2] : memref<32x64xf32, #tpu.memory_space<vmem>>, vector<32x64xf32>
    %c0_3 = arith.constant 0 : index
    %c0_4 = arith.constant 0 : index
    %2 = vector.load %arg3[%c0_3, %c0_4] : memref<1x64xf32, #tpu.memory_space<vmem>>, vector<1x64xf32>
    %cst = arith.constant dense<0.000000e+00> : vector<8x64xf32>
    %3 = tpu.matmul %0, %1, %cst {dimension_numbers = #tpu.dot_dimension_numbers<[1], [0], [0], [1], [0, 0, 1, 1], [], []>} : vector<8x32xf32>, vector<32x64xf32>, vector<8x64xf32> -> vector<8x64xf32>
    %4 = vector.broadcast %2 : vector<1x64xf32> to vector<8x64xf32>
    %5 = arith.addf %3, %4 : vector<8x64xf32>
    %cst_5 = arith.constant 0.000000e+00 : f32
    %6 = vector.broadcast %cst_5 : f32 to vector<8x64xf32>
    %7 = arith.maximumf %5, %6 : vector<8x64xf32>
    %c0_6 = arith.constant 0 : index
    %c0_7 = arith.constant 0 : index
    %8 = vector.load %arg4[%c0_6, %c0_7] : memref<64x64xf32, #tpu.memory_space<vmem>>, vector<64x64xf32>
    %c0_8 = arith.constant 0 : index
    %c0_9 = arith.constant 0 : index
    %9 = vector.load %arg5[%c0_8, %c0_9] : memref<1x64xf32, #tpu.memory_space<vmem>>, vector<1x64xf32>
    %cst_10 = arith.constant dense<0.000000e+00> : vector<8x64xf32>
    %10 = tpu.matmul %7, %8, %cst_10 {dimension_numbers = #tpu.dot_dimension_numbers<[1], [0], [0], [1], [0, 0, 1, 1], [], []>} : vector<8x64xf32>, vector<64x64xf32>, vector<8x64xf32> -> vector<8x64xf32>
    %11 = vector.broadcast %9 : vector<1x64xf32> to vector<8x64xf32>
    %12 = arith.addf %10, %11 : vector<8x64xf32>
    %cst_11 = arith.constant 0.000000e+00 : f32
    %13 = vector.broadcast %cst_11 : f32 to vector<8x64xf32>
    %14 = arith.maximumf %12, %13 : vector<8x64xf32>
    %c0_12 = arith.constant 0 : index
    %c0_13 = arith.constant 0 : index
    %15 = vector.load %arg6[%c0_12, %c0_13] : memref<64x16xf32, #tpu.memory_space<vmem>>, vector<64x16xf32>
    %c0_14 = arith.constant 0 : index
    %c0_15 = arith.constant 0 : index
    %16 = vector.load %arg7[%c0_14, %c0_15] : memref<1x16xf32, #tpu.memory_space<vmem>>, vector<1x16xf32>
    %cst_16 = arith.constant dense<0.000000e+00> : vector<8x16xf32>
    %17 = tpu.matmul %14, %15, %cst_16 {dimension_numbers = #tpu.dot_dimension_numbers<[1], [0], [0], [1], [0, 0, 1, 1], [], []>} : vector<8x64xf32>, vector<64x16xf32>, vector<8x16xf32> -> vector<8x16xf32>
    %18 = vector.broadcast %16 : vector<1x16xf32> to vector<8x16xf32>
    %19 = arith.addf %17, %18 : vector<8x16xf32>
    %c0_17 = arith.constant 0 : index
    %c0_18 = arith.constant 0 : index
    %20 = vector.load %arg8[%c0_17, %c0_18] : memref<8x16xf32, #tpu.memory_space<vmem>>, vector<8x16xf32>
    tpu.vector_store %arg8[%c0_17, %c0_18], %19 {strides = array<i32>} : memref<8x16xf32, #tpu.memory_space<vmem>>, vector<8x16xf32>,
    return
  }
  func.func @transform_0(%arg0: i32) -> (i32, i32) {
    %c0_i32 = arith.constant 0 : i32
    %c0_i32_0 = arith.constant 0 : i32
    return %arg0, %c0_i32 : i32, i32
  }
  func.func @transform_1(%arg0: i32) -> (i32, i32) {
    %c0_i32 = arith.constant 0 : i32
    %c0_i32_0 = arith.constant 0 : i32
    %c0_i32_1 = arith.constant 0 : i32
    return %c0_i32, %c0_i32_0 : i32, i32
  }
  func.func @transform_2(%arg0: i32) -> (i32, i32) {
    %c0_i32 = arith.constant 0 : i32
    %c0_i32_0 = arith.constant 0 : i32
    %c0_i32_1 = arith.constant 0 : i32
    return %c0_i32, %c0_i32_0 : i32, i32
  }
  func.func @transform_3(%arg0: i32) -> (i32, i32) {
    %c0_i32 = arith.constant 0 : i32
    %c0_i32_0 = arith.constant 0 : i32
    %c0_i32_1 = arith.constant 0 : i32
    return %c0_i32, %c0_i32_0 : i32, i32
  }
  func.func @transform_4(%arg0: i32) -> (i32, i32) {
    %c0_i32 = arith.constant 0 : i32
    %c0_i32_0 = arith.constant 0 : i32
    %c0_i32_1 = arith.constant 0 : i32
    return %c0_i32, %c0_i32_0 : i32, i32
  }
  func.func @transform_5(%arg0: i32) -> (i32, i32) {
    %c0_i32 = arith.constant 0 : i32
    %c0_i32_0 = arith.constant 0 : i32
    %c0_i32_1 = arith.constant 0 : i32
    return %c0_i32, %c0_i32_0 : i32, i32
  }
  func.func @transform_6(%arg0: i32) -> (i32, i32) {
    %c0_i32 = arith.constant 0 : i32
    %c0_i32_0 = arith.constant 0 : i32
    %c0_i32_1 = arith.constant 0 : i32
    return %c0_i32, %c0_i32_0 : i32, i32
  }
  func.func @transform_7(%arg0: i32) -> (i32, i32) {
    %c0_i32 = arith.constant 0 : i32
    %c0_i32_0 = arith.constant 0 : i32
    return %arg0, %c0_i32 : i32, i32
  }
}

</mosaic_0001>

<bundles_post_ra>
// kernel: _mlp_forward.1
= control target key start
LH: loop header
LB: loop body
LE: loop exit
PB: predicated region body
PF: predicated region fallthrough
CT: control target
= control target key end

     0   :  { %12 = vsyncpa [#allocation3], 0  ;;  %s340_s0 = inlined_call_operand.vmem [shape: f32[8,32], index: 0, kind: input, shape index: {}]   ;;  %s341_s1 = inlined_call_operand.hbm [shape: f32[32,64], index: 1, kind: input, shape index: {}]   ;;  %s342_s2 = inlined_call_operand.vmem [shape: f32[1,64], index: 2, kind: input, shape index: {}]   ;;  %s343_s3 = inlined_call_operand.vmem [shape: f32[64,64], index: 3, kind: input, shape index: {}]   ;;  %s344_s4 = inlined_call_operand.vmem [shape: f32[1,64], index: 4, kind: input, shape index: {}]   ;;  %s345_s5 = inlined_call_operand.vmem [shape: f32[64,16], index: 5, kind: input, shape index: {}]   ;;  %s346_s6 = inlined_call_operand.vmem [shape: f32[1,16], index: 6, kind: input, shape index: {}]   ;;  %s347_s7 = inlined_call_operand.hbm [shape: f32[8,16], index: 7, kind: output, shape index: {}]  }
   0x1   :  { %13 = vsyncpa [#allocation4], 0  ;;  %s20_s26 = sshll.u32 %s341_s1, 4  ;;  %s230_s27 = smov [#allocation2]   ;;  %s21_s26 = int_to_ptr.hbm [resolvable:$true] %s20_s26 }
   0x2   :  { %s22_s28 = sshll.u32 %s230_s27, 4  ;;  %s231_s29 = smov 128   ;;  %s23_s28 = int_to_ptr.vmem [resolvable:$true] %s22_s28 }
   0x3   :  { %s232_s30 = smov 8  }
   0x4   :  { %28 = dma.hbm_to_vmem [thread:$0]  %s21_s26, 512, %s23_s28, [#allocation3], %s231_s29, %s231_s29, %s232_s30  }
   0x5   :  { %226 = dma.done.wait [#allocation3], 512  }
   0x6   :  { %227 = vsyncadd [#allocation3], 4294966784  ;;  %v47_v0 = vld [vmem:[#allocation2 + $0x18] sm:$0xff]  ;;  %v46_v1 = vld [vmem:[#allocation2 + $0x10] sm:$0xff]  ;;  %vm52_vm0 = vcmask 261120   ;;  %vm89_vm1 = vcmask 523264  }
   0x7   :  { %68 = vmatpush.msra.mxu0 %v47_v0  ;;  %v84_v2 = vld [vmem:[%s343_s3 + $0x38] sm:$0xff]  ;;  %v45_v3 = vld [vmem:[#allocation2 + $0x8] sm:$0xff]  ;;  %v83_v4 = vld [vmem:[%s343_s3 + $0x30] sm:$0xff]  ;;  %s233_s20 = smov [#allocation5]   ;;  %s158_s23 = sshll.u32 %s347_s7, 4  ;;  %vm149_vm2 = vcmask 130048   ;;  %s159_s23 = int_to_ptr.hbm [resolvable:$true] %s158_s23 }
   0x8   :  { %101 = vmatpush.msra.mxu1 %v84_v2  ;;  %v82_v5 = vld [vmem:[%s343_s3 + $0x28] sm:$0xff]  ;;  %v44_v6 = vld [vmem:[#allocation2] sm:$0xff]  ;;  %v80_v9 = vld [vmem:[%s343_s3 + $0x18] sm:$0xff] }
   0x9   :  { %69 = vmatpush.msra.mxu0 %v46_v1  ;;  %v43_v7 = vld [vmem:[%s340_s0] sm:$0xff]  ;;  %v79_v10 = vld [vmem:[%s343_s3 + $0x10] sm:$0xff]  ;;  %v78_v11 = vld [vmem:[%s343_s3 + $0x8] sm:$0xff]  ;;  %s156_s0 = sshll.u32 %s233_s20, 4  ;;  %s157_s0 = int_to_ptr.vmem [resolvable:$true] %s156_s0 }
   0xa   :  { %102 = vmatpush.msra.mxu1 %v83_v4  ;;  %v81_v8 = vld [vmem:[%s343_s3 + $0x20] sm:$0xff]  ;;  %v121_v13 = vld [vmem:[%s345_s5 + $0x38] sm:$0xff]  ;;  %v120_v14 = vld [vmem:[%s345_s5 + $0x30] sm:$0xff] }
   0xb   :  { %70 = vmatpush.msra.mxu0 %v45_v3  ;;  %v77_v12 = vld [vmem:[%s343_s3] sm:$0xff]  ;;  %137 = vmatpush.msra.mxu2 %v121_v13  ;;  %v119_v15 = vld [vmem:[%s345_s5 + $0x28] sm:$0xff]  ;;  %v117_v17 = vld [vmem:[%s345_s5 + $0x18] sm:$0xff] }
   0xc   :  { %103 = vmatpush.msra.mxu1 %v82_v5  ;;  %v118_v16 = vld [vmem:[%s345_s5 + $0x20] sm:$0xff]  ;;  %v116_v22 = vld [vmem:[%s345_s5 + $0x10] sm:$0xff]  ;;  %v115_v23 = vld [vmem:[%s345_s5 + $0x8] sm:$0xff] }
   0xd   :  { %71 = vmatpush.msra.mxu0 %v44_v6  ;;  %138 = vmatpush.msra.mxu2 %v120_v14  ;;  %v175_v18 = vld [vmem:[%s342_s2] ss:$0 sm:$0xff] }
   0xe   :  { %168 = vmatmul.msk.f32.vlgmr.msra.gmra.mxu0 %vm52_vm0, %v43_v7  ;;  %104 = vmatpush.msra.mxu1 %v81_v8  ;;  %v114_v24 = vld [vmem:[%s345_s5] sm:$0xff] }
   0xf   :  { %139 = vmatpush.msra.mxu2 %v119_v15  ;;  %v176_v25 = vld [vmem:[%s344_s4] ss:$0 sm:$0xff] }
  0x10   :  { %105 = vmatpush.msra.mxu1 %v80_v9  ;;  %v177_v29 = vld [vmem:[%s346_s6] ss:$0 sm:$0xff] }
  0x11   :  { %140 = vmatpush.msra.mxu2 %v118_v16 }
  0x12   :  { %106 = vmatpush.msra.mxu1 %v79_v10 }
  0x13   :  { %141 = vmatpush.msra.mxu2 %v117_v17 }
  0x14   :  { %107 = vmatpush.msra.mxu1 %v78_v11 }
  0x15   :  { %142 = vmatpush.msra.mxu2 %v116_v22 }
  0x16   :  { %108 = vmatpush.msra.mxu1 %v77_v12 }
  0x17   :  { %143 = vmatpush.msra.mxu2 %v115_v23 }
  0x19   :  { %144 = vmatpush.msra.mxu2 %v114_v24 }
  0x8b   :  { %v73_v19 = vpop.f32.mrf.mxu0 }
  0x8c   :  { %v74_v20 = vadd.f32 %v175_v18, %v73_v19 }
  0x8e   :  { %v76_v21 = vmax.f32 %v74_v20, 0.0 }
  0x90   :  { %169 = vmatmul.msk.f32.vlgmr.msra.gmra.mxu1 %vm89_vm1, %v76_v21 }
 0x10d   :  { %v110_v26 = vpop.f32.mrf.mxu1 }
 0x10e   :  { %v111_v27 = vadd.f32 %v176_v25, %v110_v26 }
 0x110   :  { %v113_v28 = vmax.f32 %v111_v27, 0.0 }
 0x112   :  { %170 = vmatmul.msk.f32.vlgmr.msra.gmra.mxu2 %vm89_vm1, %v113_v28 }
 0x195   :  { %v146_v30 = vpop.f32.mrf.mxu2 }
 0x196   :  { %v147_v31 = vadd.f32 %v177_v29, %v146_v30 }
 0x198   :  { %150 = vst.msk [vmem:[#allocation5] sm:$0xff] %vm149_vm2, %v147_v31 }
 0x199   :  { %161 = dma.vmem_to_hbm [thread:$0]  %s157_s0, 128, %s159_s23, [#allocation4]  }
 0x19a   :  { %228 = dma.done.wait [#allocation4], 128  }
 0x19b   :  { %229 = vsyncadd [#allocation4], 4294967168 }
 0x19c   :  { %166 = vsyncpa [#allocation3], 1 }
 0x19d   :  { %167 = vsyncpa [#allocation4], 1 }

</bundles_post_ra>
